<compile_context>
chip_gen: v7x
topology: tpu7x:2x2x1
jax: 0.10.0
libtpu: 0.0.40
codegen_flags: <defaults>
</compile_context>

<pallas_src>
import jax
import jax.numpy as jnp
from jax.experimental import pallas as pl
from jax.experimental.pallas import tpu as pltpu


CFG = dict(image_size=16, patch=8, channels=3, dim=32, depth=2,
           token_mlp=8, channel_mlp=64, num_classes=2)

# Matmul-operand dtype.  Weights are STORED in this dtype in HBM (not just cast
# in-kernel) so DMA bytes / VMEM residency are actually halved.  Accumulation is
# always f32; LN / GELU / biases are always f32.
MM_DTYPE = jnp.bfloat16


def _dot(a, b):
    """MXU matmul with f32 accumulation; operands cast to the MXU dtype."""
    return jnp.dot(a.astype(MM_DTYPE), b.astype(MM_DTYPE),
                   preferred_element_type=jnp.float32)


def _layernorm(z, g, b):
    mu = jnp.mean(z, axis=-1, keepdims=True)
    var = jnp.mean(jnp.square(z - mu), axis=-1, keepdims=True)
    return (z - mu) * jax.lax.rsqrt(var + 1e-5) * g + b


# ----------------------------------------------------------------------------
# Fused dual-mixer kernel: grid = (n_mixers, depth)
#   axis 0 ("parallel")  : which mixer (img / sv)          -> 2 TCs on v7x
#   axis 1 ("arbitrary") : layer index, weights streamed per layer
# Activations live in a persistent VMEM scratch [B*S, D] across depth steps.
# ----------------------------------------------------------------------------

def _dual_mixer_kernel(patches_ref, pool_ref, ew_ref, eb_ref,
                       ln1g_ref, ln1b_ref, tw1_ref, tb1_ref, tw2_ref, tb2_ref,
                       ln2g_ref, ln2b_ref, cw1_ref, cb1_ref, cw2_ref, cb2_ref,
                       lnfg_ref, lnfb_ref, hw_ref, hb_ref,
                       out_ref, act_ref):
    d = pl.program_id(1)
    batch = pool_ref.shape[0]
    seq = tw2_ref.shape[0]          # tokens per sample

    # ---- layer 0: patch embedding (one batched [B*S, IN] x [IN, D] matmul) ----
    @pl.when(d == 0)
    def _():
        act_ref[...] = _dot(patches_ref[...], ew_ref[...]) + eb_ref[...]

    # ---- token mixing (contract over token axis with pre-transposed weights,
    #      2-D MXU matmuls per sample; live ranges bounded by the scratch store).
    #      TODO(synk): at real batch sizes make this a lax.fori_loop or a batch
    #      grid axis instead of a static unroll.
    g1, b1 = ln1g_ref[...], ln1b_ref[...]           # [1, D]
    tw1, tb1 = tw1_ref[...], tb1_ref[...]           # [T, S], [T, 1]
    tw2, tb2 = tw2_ref[...], tb2_ref[...]           # [S, T], [S, 1]
    for bi in range(batch):
        rows = pl.ds(bi * seq, seq)
        t = act_ref[rows, :]                        # [S, D]
        y = _layernorm(t, g1, b1)
        # TODO(synk): PyTorch nn.GELU default is exact erf; tanh approximation
        # used here for robust Mosaic lowering.
        h = jax.nn.gelu(_dot(tw1, y) + tb1, approximate=True)     # [T, D]
        act_ref[rows, :] = t + _dot(tw2, h) + tb2                 # [S, D]

    # ---- channel mixing: fully batched over all B*S rows (FLOP-dominant) ----
    t = act_ref[...]                                              # [B*S, D]
    z = _layernorm(t, ln2g_ref[...], ln2b_ref[...])
    h2 = jax.nn.gelu(_dot(z, cw1_ref[...]) + cb1_ref[...], approximate=True)
    act_ref[...] = t + _dot(h2, cw2_ref[...]) + cb2_ref[...]

    # ---- last layer: final LN -> mean over tokens (block-diag matmul) -> head
    @pl.when(d == pl.num_programs(1) - 1)
    def _():
        yf = _layernorm(act_ref[...], lnfg_ref[...], lnfb_ref[...])   # [B*S, D]
        pooled = jnp.dot(pool_ref[...], yf,
                         preferred_element_type=jnp.float32)          # [B, D]
        out_ref[...] = _dot(pooled, hw_ref[...]) + hb_ref[...]        # [B, ncls]


def pallas_dual_mixer(mp, patches, pool_mat):
    nm, bs, in_dim = patches.shape            # nm == 2 (img, sv); bs == B*S
    dim = mp["embed_w"].shape[2]
    depth = mp["ln1_g"].shape[1]
    t_mlp = mp["tok_w1"].shape[2]
    seq = mp["tok_w2"].shape[2]
    c_mlp = mp["ch_w1"].shape[3]
    ncls = mp["head_w"].shape[2]
    batch = pool_mat.shape[0]

    def per_mixer(*shape):                    # resident across all depth steps
        nd = len(shape)
        return pl.BlockSpec((None,) + shape, lambda i, d, nd=nd: (i,) + (0,) * nd)

    def per_layer(*shape):                    # streamed: one layer per grid step
        nd = len(shape)
        return pl.BlockSpec((None, None) + shape,
                            lambda i, d, nd=nd: (i, d) + (0,) * nd)

    operands = [
        (patches,        per_mixer(bs, in_dim)),
        (pool_mat,       pl.BlockSpec((batch, bs), lambda i, d: (0, 0))),
        (mp["embed_w"],  per_mixer(in_dim, dim)),
        (mp["embed_b"],  per_mixer(1, dim)),
        (mp["ln1_g"],    per_layer(1, dim)),
        (mp["ln1_b"],    per_layer(1, dim)),
        (mp["tok_w1"],   per_layer(t_mlp, seq)),
        (mp["tok_b1"],   per_layer(t_mlp, 1)),
        (mp["tok_w2"],   per_layer(seq, t_mlp)),
        (mp["tok_b2"],   per_layer(seq, 1)),
        (mp["ln2_g"],    per_layer(1, dim)),
        (mp["ln2_b"],    per_layer(1, dim)),
        (mp["ch_w1"],    per_layer(dim, c_mlp)),
        (mp["ch_b1"],    per_layer(1, c_mlp)),
        (mp["ch_w2"],    per_layer(c_mlp, dim)),
        (mp["ch_b2"],    per_layer(1, dim)),
        (mp["lnf_g"],    per_mixer(1, dim)),
        (mp["lnf_b"],    per_mixer(1, dim)),
        (mp["head_w"],   per_mixer(dim, ncls)),
        (mp["head_b"],   per_mixer(1, ncls)),
    ]
    arrays, specs = zip(*operands)

    return pl.pallas_call(
        _dual_mixer_kernel,
        out_shape=jax.ShapeDtypeStruct((nm, batch, ncls), jnp.float32),
        grid=(nm, depth),
        in_specs=list(specs),
        out_specs=pl.BlockSpec((None, batch, ncls), lambda i, d: (i, 0, 0)),
        scratch_shapes=[pltpu.VMEM((bs, dim), jnp.float32)],   # activation carry
        compiler_params=pltpu.CompilerParams(
            dimension_semantics=("parallel", "arbitrary"),
            # Above the 16/32 MiB scoped defaults, below v7x's 64 MiB physical.
            vmem_limit_bytes=48 * 1024 * 1024),
    )(*arrays)


# ----------------------------------------------------------------------------
# Glue (plain JAX) and forward
# ----------------------------------------------------------------------------

def patchify(x_nchw, patch):
    b, c, hh, ww = x_nchw.shape
    gh, gw = hh // patch, ww // patch
    x = x_nchw.reshape(b, c, gh, patch, gw, patch)
    x = x.transpose(0, 2, 4, 1, 3, 5)                 # [B, gh, gw, C, p, p]
    return x.reshape(b * gh * gw, c * patch * patch)  # [B*S, C*p*p], (c,kh,kw)


def mixer_base_fuse_forward(params, img, sv, cfg):
    patch = cfg["patch"]
    s = (cfg["image_size"] // patch) ** 2
    b = img.shape[0]
    # Stack the two independent mixers along a leading axis -> one fused call.
    patches = jnp.stack([patchify(img, patch), patchify(sv, patch)], axis=0)
    # Block-diagonal mean-pool matrix: pooled[b] = mean over that sample's rows.
    pool_mat = jnp.kron(jnp.eye(b, dtype=jnp.float32),
                        jnp.full((1, s), 1.0 / s, jnp.float32))    # [B, B*S]
    logits = pallas_dual_mixer(params["mixers"], patches, pool_mat)  # [2, B, 2]
    # concat + fc(4 -> n_class) is tiny: let XLA fuse it (no extra launch).
    fuse = jnp.concatenate([logits[0], logits[1]], axis=1)           # [B, 4]
    out = fuse @ params["fc_w"] + params["fc_b"]                     # [B, n_cls]
    return fuse, out


# ----------------------------------------------------------------------------
# Deterministic parameter init.  Matmul weights stored in MM_DTYPE (bf16) in
# HBM; LN params and biases stay f32.  Token weights stored pre-transposed for
# left-multiplication: tok_w1 [T, S], tok_w2 [S, T].
# ----------------------------------------------------------------------------

def _rand(key, shape, dtype, scale=0.02):
    return (jax.random.normal(key, shape, jnp.float32) * scale).astype(dtype)


def init_mixer(key, cfg):
    s = (cfg["image_size"] // cfg["patch"]) ** 2
    in_dim = cfg["channels"] * cfg["patch"] ** 2
    dim, t_mlp, c_mlp = cfg["dim"], cfg["token_mlp"], cfg["channel_mlp"]
    depth, ncls = cfg["depth"], cfg["num_classes"]
    keys = jax.random.split(key, 2 + depth)

    ln1_g, ln1_b, tw1, tb1, tw2, tb2 = [], [], [], [], [], []
    ln2_g, ln2_b, cw1, cb1, cw2, cb2 = [], [], [], [], [], []
    for d in range(depth):
        bk = jax.random.split(keys[2 + d], 4)
        ln1_g.append(jnp.ones((1, dim), jnp.float32))
        ln1_b.append(jnp.zeros((1, dim), jnp.float32))
        tw1.append(_rand(bk[0], (t_mlp, s), MM_DTYPE))
        tb1.append(jnp.zeros((t_mlp, 1), jnp.float32))
        tw2.append(_rand(bk[1], (s, t_mlp), MM_DTYPE))
        tb2.append(jnp.zeros((s, 1), jnp.float32))
        ln2_g.append(jnp.ones((1, dim), jnp.float32))
        ln2_b.append(jnp.zeros((1, dim), jnp.float32))
        cw1.append(_rand(bk[2], (dim, c_mlp), MM_DTYPE))
        cb1.append(jnp.zeros((1, c_mlp), jnp.float32))
        cw2.append(_rand(bk[3], (c_mlp, dim), MM_DTYPE))
        cb2.append(jnp.zeros((1, dim), jnp.float32))

    return dict(
        embed_w=_rand(keys[0], (in_dim, dim), MM_DTYPE),
        embed_b=jnp.zeros((1, dim), jnp.float32),
        ln1_g=jnp.stack(ln1_g), ln1_b=jnp.stack(ln1_b),
        tok_w1=jnp.stack(tw1), tok_b1=jnp.stack(tb1),
        tok_w2=jnp.stack(tw2), tok_b2=jnp.stack(tb2),
        ln2_g=jnp.stack(ln2_g), ln2_b=jnp.stack(ln2_b),
        ch_w1=jnp.stack(cw1), ch_b1=jnp.stack(cb1),
        ch_w2=jnp.stack(cw2), ch_b2=jnp.stack(cb2),
        lnf_g=jnp.ones((1, dim), jnp.float32),
        lnf_b=jnp.zeros((1, dim), jnp.float32),
        head_w=_rand(keys[1], (dim, ncls), MM_DTYPE),
        head_b=jnp.zeros((1, ncls), jnp.float32),
    )


def init_params(key, n_class, cfg):
    k1, k2, k3 = jax.random.split(key, 3)
    p_img = init_mixer(k1, cfg)
    p_sv = init_mixer(k2, cfg)
    mixers = jax.tree_util.tree_map(lambda a, b: jnp.stack([a, b], axis=0),
                                    p_img, p_sv)
    return dict(mixers=mixers,
                fc_w=_rand(k3, (2 * cfg["num_classes"], n_class), jnp.float32),
                fc_b=jnp.zeros((1, n_class), jnp.float32))


# ----------------------------------------------------------------------------
# Main
# ----------------------------------------------------------------------------

if __name__ == "__main__":
    BATCH, N_CLASS = 2, 3
    key = jax.random.PRNGKey(0)
    k_img, k_sv, k_param = jax.random.split(key, 3)

    img = jax.random.normal(
        k_img, (BATCH, CFG["channels"], CFG["image_size"], CFG["image_size"]),
        jnp.float32)
    sv = jax.random.normal(
        k_sv, (BATCH, CFG["channels"], CFG["image_size"], CFG["image_size"]),
        jnp.float32)

    params = init_params(k_param, N_CLASS, CFG)

    fwd = jax.jit(lambda p, a, b: mixer_base_fuse_forward(p, a, b, CFG))
    fuse, out = fwd(params, img, sv)
    jax.block_until_ready((fuse, out))

    assert fuse.shape == (BATCH, 2 * CFG["num_classes"])
    assert out.shape == (BATCH, N_CLASS)
    assert fuse.dtype == jnp.float32 and out.dtype == jnp.float32
    assert bool(jnp.all(jnp.isfinite(fuse))) and bool(jnp.all(jnp.isfinite(out)))

    print("KERNEL_OK")
</pallas_src>

<mosaic_0001>
module attributes {stable_mosaic.version = 11 : i64} {
  func.func @_dual_mixer_kernel(%arg0: i32, %arg1: i32, %arg2: memref<1x8x192xf32, #tpu.memory_space<vmem>>, %arg3: memref<2x8xf32, #tpu.memory_space<vmem>>, %arg4: memref<1x192x32xbf16, #tpu.memory_space<vmem>>, %arg5: memref<1x1x32xf32, #tpu.memory_space<vmem>>, %arg6: memref<1x1x1x32xf32, #tpu.memory_space<vmem>>, %arg7: memref<1x1x1x32xf32, #tpu.memory_space<vmem>>, %arg8: memref<1x1x8x4xbf16, #tpu.memory_space<vmem>>, %arg9: memref<1x1x8x1xf32, #tpu.memory_space<vmem>>, %arg10: memref<1x1x4x8xbf16, #tpu.memory_space<vmem>>, %arg11: memref<1x1x4x1xf32, #tpu.memory_space<vmem>>, %arg12: memref<1x1x1x32xf32, #tpu.memory_space<vmem>>, %arg13: memref<1x1x1x32xf32, #tpu.memory_space<vmem>>, %arg14: memref<1x1x32x64xbf16, #tpu.memory_space<vmem>>, %arg15: memref<1x1x1x64xf32, #tpu.memory_space<vmem>>, %arg16: memref<1x1x64x32xbf16, #tpu.memory_space<vmem>>, %arg17: memref<1x1x1x32xf32, #tpu.memory_space<vmem>>, %arg18: memref<1x1x32xf32, #tpu.memory_space<vmem>>, %arg19: memref<1x1x32xf32, #tpu.memory_space<vmem>>, %arg20: memref<1x32x2xbf16, #tpu.memory_space<vmem>>, %arg21: memref<1x1x2xf32, #tpu.memory_space<vmem>>, %arg22: memref<1x2x2xf32, #tpu.memory_space<vmem>>, %arg23: memref<8x32xf32, #tpu.memory_space<vmem>>) attributes {dimension_semantics = [#tpu.dimension_semantics<parallel>, #tpu.dimension_semantics<arbitrary>], iteration_bounds = array<i64: 2, 2>, scalar_prefetch = 0 : i64, scratch_operands = 1 : i64, tpu.core_type = #tpu.core_type<tc>, window_params = [{transform_indices = @transform_0, window_bounds = array<i64: 1, 8, 192>}, {pipeline_mode = #tpu.pipeline_mode<synchronous>, transform_indices = @transform_1, window_bounds = array<i64: 2, 8>}, {transform_indices = @transform_2, window_bounds = array<i64: 1, 192, 32>}, {transform_indices = @transform_3, window_bounds = array<i64: 1, 1, 32>}, {transform_indices = @transform_4, window_bounds = array<i64: 1, 1, 1, 32>}, {transform_indices = @transform_5, window_bounds = array<i64: 1, 1, 1, 32>}, {transform_indices = @transform_6, window_bounds = array<i64: 1, 1, 8, 4>}, {transform_indices = @transform_7, window_bounds = array<i64: 1, 1, 8, 1>}, {transform_indices = @transform_8, window_bounds = array<i64: 1, 1, 4, 8>}, {transform_indices = @transform_9, window_bounds = array<i64: 1, 1, 4, 1>}, {transform_indices = @transform_10, window_bounds = array<i64: 1, 1, 1, 32>}, {transform_indices = @transform_11, window_bounds = array<i64: 1, 1, 1, 32>}, {transform_indices = @transform_12, window_bounds = array<i64: 1, 1, 32, 64>}, {transform_indices = @transform_13, window_bounds = array<i64: 1, 1, 1, 64>}, {transform_indices = @transform_14, window_bounds = array<i64: 1, 1, 64, 32>}, {transform_indices = @transform_15, window_bounds = array<i64: 1, 1, 1, 32>}, {transform_indices = @transform_16, window_bounds = array<i64: 1, 1, 32>}, {transform_indices = @transform_17, window_bounds = array<i64: 1, 1, 32>}, {transform_indices = @transform_18, window_bounds = array<i64: 1, 32, 2>}, {transform_indices = @transform_19, window_bounds = array<i64: 1, 1, 2>}, {transform_indices = @transform_20, window_bounds = array<i64: 1, 2, 2>}]} {
    %c0_i32 = arith.constant 0 : i32
    %0 = arith.cmpi eq, %arg1, %c0_i32 : i32
    %1 = arith.extui %0 : i1 to i32
    %c0_i32_0 = arith.constant 0 : i32
    %2 = arith.cmpi ne, %1, %c0_i32_0 : i32
    scf.if %2 {
      %c0_92 = arith.constant 0 : index
      %c0_93 = arith.constant 0 : index
      %c0_94 = arith.constant 0 : index
      %168 = vector.load %arg2[%c0_92, %c0_93, %c0_94] : memref<1x8x192xf32, #tpu.memory_space<vmem>>, vector<1x8x192xf32>
      %169 = vector.shape_cast %168 : vector<1x8x192xf32> to vector<8x192xf32>
      %c0_95 = arith.constant 0 : index
      %c0_96 = arith.constant 0 : index
      %c0_97 = arith.constant 0 : index
      %170 = vector.load %arg4[%c0_95, %c0_96, %c0_97] : memref<1x192x32xbf16, #tpu.memory_space<vmem>>, vector<1x192x32xbf16>
      %171 = vector.shape_cast %170 : vector<1x192x32xbf16> to vector<192x32xbf16>
      %172 = arith.truncf %169 : vector<8x192xf32> to vector<8x192xbf16>
      %cst_98 = arith.constant dense<0.000000e+00> : vector<8x32xf32>
      %173 = tpu.matmul %172, %171, %cst_98 {dimension_numbers = #tpu.dot_dimension_numbers<[1], [0], [0], [1], [0, 0, 1, 1], [], []>} : vector<8x192xbf16>, vector<192x32xbf16>, vector<8x32xf32> -> vector<8x32xf32>
      %c0_99 = arith.constant 0 : index
      %c0_100 = arith.constant 0 : index
      %c0_101 = arith.constant 0 : index
      %174 = vector.load %arg5[%c0_99, %c0_100, %c0_101] : memref<1x1x32xf32, #tpu.memory_space<vmem>>, vector<1x1x32xf32>
      %175 = vector.shape_cast %174 : vector<1x1x32xf32> to vector<1x32xf32>
      %176 = vector.broadcast %175 : vector<1x32xf32> to vector<8x32xf32>
      %177 = arith.addf %173, %176 : vector<8x32xf32>
      %c0_102 = arith.constant 0 : index
      %c0_103 = arith.constant 0 : index
      %178 = vector.load %arg23[%c0_102, %c0_103] : memref<8x32xf32, #tpu.memory_space<vmem>>, vector<8x32xf32>
      tpu.vector_store %arg23[%c0_102, %c0_103], %177 {strides = array<i32>} : memref<8x32xf32, #tpu.memory_space<vmem>>, vector<8x32xf32>,
    } else {
    }
    %c0 = arith.constant 0 : index
    %c0_1 = arith.constant 0 : index
    %c0_2 = arith.constant 0 : index
    %c0_3 = arith.constant 0 : index
    %3 = vector.load %arg6[%c0, %c0_1, %c0_2, %c0_3] : memref<1x1x1x32xf32, #tpu.memory_space<vmem>>, vector<1x1x1x32xf32>
    %4 = vector.shape_cast %3 : vector<1x1x1x32xf32> to vector<1x32xf32>
    %c0_4 = arith.constant 0 : index
    %c0_5 = arith.constant 0 : index
    %c0_6 = arith.constant 0 : index
    %c0_7 = arith.constant 0 : index
    %5 = vector.load %arg7[%c0_4, %c0_5, %c0_6, %c0_7] : memref<1x1x1x32xf32, #tpu.memory_space<vmem>>, vector<1x1x1x32xf32>
    %6 = vector.shape_cast %5 : vector<1x1x1x32xf32> to vector<1x32xf32>
    %c0_8 = arith.constant 0 : index
    %c0_9 = arith.constant 0 : index
    %c0_10 = arith.constant 0 : index
    %c0_11 = arith.constant 0 : index
    %7 = vector.load %arg8[%c0_8, %c0_9, %c0_10, %c0_11] : memref<1x1x8x4xbf16, #tpu.memory_space<vmem>>, vector<1x1x8x4xbf16>
    %8 = vector.shape_cast %7 : vector<1x1x8x4xbf16> to vector<8x4xbf16>
    %c0_12 = arith.constant 0 : index
    %c0_13 = arith.constant 0 : index
    %c0_14 = arith.constant 0 : index
    %c0_15 = arith.constant 0 : index
    %9 = vector.load %arg9[%c0_12, %c0_13, %c0_14, %c0_15] : memref<1x1x8x1xf32, #tpu.memory_space<vmem>>, vector<1x1x8x1xf32>
    %10 = vector.shape_cast %9 : vector<1x1x8x1xf32> to vector<8x1xf32>
    %c0_16 = arith.constant 0 : index
    %c0_17 = arith.constant 0 : index
    %c0_18 = arith.constant 0 : index
    %c0_19 = arith.constant 0 : index
    %11 = vector.load %arg10[%c0_16, %c0_17, %c0_18, %c0_19] : memref<1x1x4x8xbf16, #tpu.memory_space<vmem>>, vector<1x1x4x8xbf16>
    %12 = vector.shape_cast %11 : vector<1x1x4x8xbf16> to vector<4x8xbf16>
    %c0_20 = arith.constant 0 : index
    %c0_21 = arith.constant 0 : index
    %c0_22 = arith.constant 0 : index
    %c0_23 = arith.constant 0 : index
    %13 = vector.load %arg11[%c0_20, %c0_21, %c0_22, %c0_23] : memref<1x1x4x1xf32, #tpu.memory_space<vmem>>, vector<1x1x4x1xf32>
    %14 = vector.shape_cast %13 : vector<1x1x4x1xf32> to vector<4x1xf32>
    %c0_24 = arith.constant 0 : index
    %c0_25 = arith.constant 0 : index
    %15 = vector.load %arg23[%c0_24, %c0_25] : memref<8x32xf32, #tpu.memory_space<vmem>>, vector<4x32xf32>
    %cst = arith.constant dense<0.000000e+00> : vector<4xf32>
    %16 = vector.multi_reduction <add>, %15, %cst [1] : vector<4x32xf32> to vector<4xf32>
    %17 = vector.shape_cast %16 : vector<4xf32> to vector<4x1xf32>
    %cst_26 = arith.constant 3.200000e+01 : f32
    %18 = vector.broadcast %cst_26 : f32 to vector<4x1xf32>
    %19 = arith.divf %17, %18 : vector<4x1xf32>
    %20 = vector.broadcast %19 : vector<4x1xf32> to vector<4x32xf32>
    %21 = arith.subf %15, %20 : vector<4x32xf32>
    %22 = arith.mulf %21, %21 : vector<4x32xf32>
    %cst_27 = arith.constant dense<0.000000e+00> : vector<4xf32>
    %23 = vector.multi_reduction <add>, %22, %cst_27 [1] : vector<4x32xf32> to vector<4xf32>
    %24 = vector.shape_cast %23 : vector<4xf32> to vector<4x1xf32>
    %cst_28 = arith.constant 3.200000e+01 : f32
    %25 = vector.broadcast %cst_28 : f32 to vector<4x1xf32>
    %26 = arith.divf %24, %25 : vector<4x1xf32>
    %27 = vector.broadcast %19 : vector<4x1xf32> to vector<4x32xf32>
    %28 = arith.subf %15, %27 : vector<4x32xf32>
    %cst_29 = arith.constant 9.99999974E-6 : f32
    %29 = vector.broadcast %cst_29 : f32 to vector<4x1xf32>
    %30 = arith.addf %26, %29 : vector<4x1xf32>
    %31 = math.rsqrt %30 : vector<4x1xf32>
    %32 = vector.broadcast %31 : vector<4x1xf32> to vector<4x32xf32>
    %33 = arith.mulf %28, %32 : vector<4x32xf32>
    %34 = vector.broadcast %4 : vector<1x32xf32> to vector<4x32xf32>
    %35 = arith.mulf %33, %34 : vector<4x32xf32>
    %36 = vector.broadcast %6 : vector<1x32xf32> to vector<4x32xf32>
    %37 = arith.addf %35, %36 : vector<4x32xf32>
    %38 = arith.truncf %37 : vector<4x32xf32> to vector<4x32xbf16>
    %cst_30 = arith.constant dense<0.000000e+00> : vector<8x32xf32>
    %39 = tpu.matmul %8, %38, %cst_30 {dimension_numbers = #tpu.dot_dimension_numbers<[1], [0], [0], [1], [0, 0, 1, 1], [], []>} : vector<8x4xbf16>, vector<4x32xbf16>, vector<8x32xf32> -> vector<8x32xf32>
    %40 = vector.broadcast %10 : vector<8x1xf32> to vector<8x32xf32>
    %41 = arith.addf %39, %40 : vector<8x32xf32>
    %42 = arith.mulf %41, %41 : vector<8x32xf32>
    %43 = arith.mulf %41, %42 : vector<8x32xf32>
    %cst_31 = arith.constant 4.471500e-02 : f32
    %44 = vector.broadcast %cst_31 : f32 to vector<8x32xf32>
    %45 = arith.mulf %44, %43 : vector<8x32xf32>
    %46 = arith.addf %41, %45 : vector<8x32xf32>
    %cst_32 = arith.constant 0.797884583 : f32
    %47 = vector.broadcast %cst_32 : f32 to vector<8x32xf32>
    %48 = arith.mulf %47, %46 : vector<8x32xf32>
    %49 = math.tanh %48 : vector<8x32xf32>
    %cst_33 = arith.constant 1.000000e+00 : f32
    %50 = vector.broadcast %cst_33 : f32 to vector<8x32xf32>
    %51 = arith.addf %50, %49 : vector<8x32xf32>
    %cst_34 = arith.constant 5.000000e-01 : f32
    %52 = vector.broadcast %cst_34 : f32 to vector<8x32xf32>
    %53 = arith.mulf %52, %51 : vector<8x32xf32>
    %54 = arith.mulf %41, %53 : vector<8x32xf32>
    %55 = arith.truncf %54 : vector<8x32xf32> to vector<8x32xbf16>
    %cst_35 = arith.constant dense<0.000000e+00> : vector<4x32xf32>
    %56 = tpu.matmul %12, %55, %cst_35 {dimension_numbers = #tpu.dot_dimension_numbers<[1], [0], [0], [1], [0, 0, 1, 1], [], []>} : vector<4x8xbf16>, vector<8x32xbf16>, vector<4x32xf32> -> vector<4x32xf32>
    %57 = arith.addf %15, %56 : vector<4x32xf32>
    %58 = vector.broadcast %14 : vector<4x1xf32> to vector<4x32xf32>
    %59 = arith.addf %57, %58 : vector<4x32xf32>
    %c0_36 = arith.constant 0 : index
    %c0_37 = arith.constant 0 : index
    %60 = vector.load %arg23[%c0_36, %c0_37] : memref<8x32xf32, #tpu.memory_space<vmem>>, vector<4x32xf32>
    tpu.vector_store %arg23[%c0_36, %c0_37], %59 {strides = array<i32>} : memref<8x32xf32, #tpu.memory_space<vmem>>, vector<4x32xf32>,
    %c4 = arith.constant 4 : index
    %c0_38 = arith.constant 0 : index
    %61 = vector.load %arg23[%c4, %c0_38] : memref<8x32xf32, #tpu.memory_space<vmem>>, vector<4x32xf32>
    %cst_39 = arith.constant dense<0.000000e+00> : vector<4xf32>
    %62 = vector.multi_reduction <add>, %61, %cst_39 [1] : vector<4x32xf32> to vector<4xf32>
    %63 = vector.shape_cast %62 : vector<4xf32> to vector<4x1xf32>
    %cst_40 = arith.constant 3.200000e+01 : f32
    %64 = vector.broadcast %cst_40 : f32 to vector<4x1xf32>
    %65 = arith.divf %63, %64 : vector<4x1xf32>
    %66 = vector.broadcast %65 : vector<4x1xf32> to vector<4x32xf32>
    %67 = arith.subf %61, %66 : vector<4x32xf32>
    %68 = arith.mulf %67, %67 : vector<4x32xf32>
    %cst_41 = arith.constant dense<0.000000e+00> : vector<4xf32>
    %69 = vector.multi_reduction <add>, %68, %cst_41 [1] : vector<4x32xf32> to vector<4xf32>
    %70 = vector.shape_cast %69 : vector<4xf32> to vector<4x1xf32>
    %cst_42 = arith.constant 3.200000e+01 : f32
    %71 = vector.broadcast %cst_42 : f32 to vector<4x1xf32>
    %72 = arith.divf %70, %71 : vector<4x1xf32>
    %73 = vector.broadcast %65 : vector<4x1xf32> to vector<4x32xf32>
    %74 = arith.subf %61, %73 : vector<4x32xf32>
    %cst_43 = arith.constant 9.99999974E-6 : f32
    %75 = vector.broadcast %cst_43 : f32 to vector<4x1xf32>
    %76 = arith.addf %72, %75 : vector<4x1xf32>
    %77 = math.rsqrt %76 : vector<4x1xf32>
    %78 = vector.broadcast %77 : vector<4x1xf32> to vector<4x32xf32>
    %79 = arith.mulf %74, %78 : vector<4x32xf32>
    %80 = vector.broadcast %4 : vector<1x32xf32> to vector<4x32xf32>
    %81 = arith.mulf %79, %80 : vector<4x32xf32>
    %82 = vector.broadcast %6 : vector<1x32xf32> to vector<4x32xf32>
    %83 = arith.addf %81, %82 : vector<4x32xf32>
    %84 = arith.truncf %83 : vector<4x32xf32> to vector<4x32xbf16>
    %cst_44 = arith.constant dense<0.000000e+00> : vector<8x32xf32>
    %85 = tpu.matmul %8, %84, %cst_44 {dimension_numbers = #tpu.dot_dimension_numbers<[1], [0], [0], [1], [0, 0, 1, 1], [], []>} : vector<8x4xbf16>, vector<4x32xbf16>, vector<8x32xf32> -> vector<8x32xf32>
    %86 = vector.broadcast %10 : vector<8x1xf32> to vector<8x32xf32>
    %87 = arith.addf %85, %86 : vector<8x32xf32>
    %88 = arith.mulf %87, %87 : vector<8x32xf32>
    %89 = arith.mulf %87, %88 : vector<8x32xf32>
    %cst_45 = arith.constant 4.471500e-02 : f32
    %90 = vector.broadcast %cst_45 : f32 to vector<8x32xf32>
    %91 = arith.mulf %90, %89 : vector<8x32xf32>
    %92 = arith.addf %87, %91 : vector<8x32xf32>
    %cst_46 = arith.constant 0.797884583 : f32
    %93 = vector.broadcast %cst_46 : f32 to vector<8x32xf32>
    %94 = arith.mulf %93, %92 : vector<8x32xf32>
    %95 = math.tanh %94 : vector<8x32xf32>
    %cst_47 = arith.constant 1.000000e+00 : f32
    %96 = vector.broadcast %cst_47 : f32 to vector<8x32xf32>
    %97 = arith.addf %96, %95 : vector<8x32xf32>
    %cst_48 = arith.constant 5.000000e-01 : f32
    %98 = vector.broadcast %cst_48 : f32 to vector<8x32xf32>
    %99 = arith.mulf %98, %97 : vector<8x32xf32>
    %100 = arith.mulf %87, %99 : vector<8x32xf32>
    %101 = arith.truncf %100 : vector<8x32xf32> to vector<8x32xbf16>
    %cst_49 = arith.constant dense<0.000000e+00> : vector<4x32xf32>
    %102 = tpu.matmul %12, %101, %cst_49 {dimension_numbers = #tpu.dot_dimension_numbers<[1], [0], [0], [1], [0, 0, 1, 1], [], []>} : vector<4x8xbf16>, vector<8x32xbf16>, vector<4x32xf32> -> vector<4x32xf32>
    %103 = arith.addf %61, %102 : vector<4x32xf32>
    %104 = vector.broadcast %14 : vector<4x1xf32> to vector<4x32xf32>
    %105 = arith.addf %103, %104 : vector<4x32xf32>
    %c4_50 = arith.constant 4 : index
    %c0_51 = arith.constant 0 : index
    %106 = vector.load %arg23[%c4_50, %c0_51] : memref<8x32xf32, #tpu.memory_space<vmem>>, vector<4x32xf32>
    tpu.vector_store %arg23[%c4_50, %c0_51], %105 {strides = array<i32>} : memref<8x32xf32, #tpu.memory_space<vmem>>, vector<4x32xf32>,
    %c0_52 = arith.constant 0 : index
    %c0_53 = arith.constant 0 : index
    %107 = vector.load %arg23[%c0_52, %c0_53] : memref<8x32xf32, #tpu.memory_space<vmem>>, vector<8x32xf32>
    %c0_54 = arith.constant 0 : index
    %c0_55 = arith.constant 0 : index
    %c0_56 = arith.constant 0 : index
    %c0_57 = arith.constant 0 : index
    %108 = vector.load %arg12[%c0_54, %c0_55, %c0_56, %c0_57] : memref<1x1x1x32xf32, #tpu.memory_space<vmem>>, vector<1x1x1x32xf32>
    %109 = vector.shape_cast %108 : vector<1x1x1x32xf32> to vector<1x32xf32>
    %c0_58 = arith.constant 0 : index
    %c0_59 = arith.constant 0 : index
    %c0_60 = arith.constant 0 : index
    %c0_61 = arith.constant 0 : index
    %110 = vector.load %arg13[%c0_58, %c0_59, %c0_60, %c0_61] : memref<1x1x1x32xf32, #tpu.memory_space<vmem>>, vector<1x1x1x32xf32>
    %111 = vector.shape_cast %110 : vector<1x1x1x32xf32> to vector<1x32xf32>
    %cst_62 = arith.constant dense<0.000000e+00> : vector<8xf32>
    %112 = vector.multi_reduction <add>, %107, %cst_62 [1] : vector<8x32xf32> to vector<8xf32>
    %113 = vector.shape_cast %112 : vector<8xf32> to vector<8x1xf32>
    %cst_63 = arith.constant 3.200000e+01 : f32
    %114 = vector.broadcast %cst_63 : f32 to vector<8x1xf32>
    %115 = arith.divf %113, %114 : vector<8x1xf32>
    %116 = vector.broadcast %115 : vector<8x1xf32> to vector<8x32xf32>
    %117 = arith.subf %107, %116 : vector<8x32xf32>
    %118 = arith.mulf %117, %117 : vector<8x32xf32>
    %cst_64 = arith.constant dense<0.000000e+00> : vector<8xf32>
    %119 = vector.multi_reduction <add>, %118, %cst_64 [1] : vector<8x32xf32> to vector<8xf32>
    %120 = vector.shape_cast %119 : vector<8xf32> to vector<8x1xf32>
    %cst_65 = arith.constant 3.200000e+01 : f32
    %121 = vector.broadcast %cst_65 : f32 to vector<8x1xf32>
    %122 = arith.divf %120, %121 : vector<8x1xf32>
    %123 = vector.broadcast %115 : vector<8x1xf32> to vector<8x32xf32>
    %124 = arith.subf %107, %123 : vector<8x32xf32>
    %cst_66 = arith.constant 9.99999974E-6 : f32
    %125 = vector.broadcast %cst_66 : f32 to vector<8x1xf32>
    %126 = arith.addf %122, %125 : vector<8x1xf32>
    %127 = math.rsqrt %126 : vector<8x1xf32>
    %128 = vector.broadcast %127 : vector<8x1xf32> to vector<8x32xf32>
    %129 = arith.mulf %124, %128 : vector<8x32xf32>
    %130 = vector.broadcast %109 : vector<1x32xf32> to vector<8x32xf32>
    %131 = arith.mulf %129, %130 : vector<8x32xf32>
    %132 = vector.broadcast %111 : vector<1x32xf32> to vector<8x32xf32>
    %133 = arith.addf %131, %132 : vector<8x32xf32>
    %c0_67 = arith.constant 0 : index
    %c0_68 = arith.constant 0 : index
    %c0_69 = arith.constant 0 : index
    %c0_70 = arith.constant 0 : index
    %134 = vector.load %arg14[%c0_67, %c0_68, %c0_69, %c0_70] : memref<1x1x32x64xbf16, #tpu.memory_space<vmem>>, vector<1x1x32x64xbf16>
    %135 = vector.shape_cast %134 : vector<1x1x32x64xbf16> to vector<32x64xbf16>
    %136 = arith.truncf %133 : vector<8x32xf32> to vector<8x32xbf16>
    %cst_71 = arith.constant dense<0.000000e+00> : vector<8x64xf32>
    %137 = tpu.matmul %136, %135, %cst_71 {dimension_numbers = #tpu.dot_dimension_numbers<[1], [0], [0], [1], [0, 0, 1, 1], [], []>} : vector<8x32xbf16>, vector<32x64xbf16>, vector<8x64xf32> -> vector<8x64xf32>
    %c0_72 = arith.constant 0 : index
    %c0_73 = arith.constant 0 : index
    %c0_74 = arith.constant 0 : index
    %c0_75 = arith.constant 0 : index
    %138 = vector.load %arg15[%c0_72, %c0_73, %c0_74, %c0_75] : memref<1x1x1x64xf32, #tpu.memory_space<vmem>>, vector<1x1x1x64xf32>
    %139 = vector.shape_cast %138 : vector<1x1x1x64xf32> to vector<1x64xf32>
    %140 = vector.broadcast %139 : vector<1x64xf32> to vector<8x64xf32>
    %141 = arith.addf %137, %140 : vector<8x64xf32>
    %142 = arith.mulf %141, %141 : vector<8x64xf32>
    %143 = arith.mulf %141, %142 : vector<8x64xf32>
    %cst_76 = arith.constant 4.471500e-02 : f32
    %144 = vector.broadcast %cst_76 : f32 to vector<8x64xf32>
    %145 = arith.mulf %144, %143 : vector<8x64xf32>
    %146 = arith.addf %141, %145 : vector<8x64xf32>
    %cst_77 = arith.constant 0.797884583 : f32
    %147 = vector.broadcast %cst_77 : f32 to vector<8x64xf32>
    %148 = arith.mulf %147, %146 : vector<8x64xf32>
    %149 = math.tanh %148 : vector<8x64xf32>
    %cst_78 = arith.constant 1.000000e+00 : f32
    %150 = vector.broadcast %cst_78 : f32 to vector<8x64xf32>
    %151 = arith.addf %150, %149 : vector<8x64xf32>
    %cst_79 = arith.constant 5.000000e-01 : f32
    %152 = vector.broadcast %cst_79 : f32 to vector<8x64xf32>
    %153 = arith.mulf %152, %151 : vector<8x64xf32>
    %154 = arith.mulf %141, %153 : vector<8x64xf32>
    %c0_80 = arith.constant 0 : index
    %c0_81 = arith.constant 0 : index
    %c0_82 = arith.constant 0 : index
    %c0_83 = arith.constant 0 : index
    %155 = vector.load %arg16[%c0_80, %c0_81, %c0_82, %c0_83] : memref<1x1x64x32xbf16, #tpu.memory_space<vmem>>, vector<1x1x64x32xbf16>
    %156 = vector.shape_cast %155 : vector<1x1x64x32xbf16> to vector<64x32xbf16>
    %157 = arith.truncf %154 : vector<8x64xf32> to vector<8x64xbf16>
    %cst_84 = arith.constant dense<0.000000e+00> : vector<8x32xf32>
    %158 = tpu.matmul %157, %156, %cst_84 {dimension_numbers = #tpu.dot_dimension_numbers<[1], [0], [0], [1], [0, 0, 1, 1], [], []>} : vector<8x64xbf16>, vector<64x32xbf16>, vector<8x32xf32> -> vector<8x32xf32>
    %159 = arith.addf %107, %158 : vector<8x32xf32>
    %c0_85 = arith.constant 0 : index
    %c0_86 = arith.constant 0 : index
    %c0_87 = arith.constant 0 : index
    %c0_88 = arith.constant 0 : index
    %160 = vector.load %arg17[%c0_85, %c0_86, %c0_87, %c0_88] : memref<1x1x1x32xf32, #tpu.memory_space<vmem>>, vector<1x1x1x32xf32>
    %161 = vector.shape_cast %160 : vector<1x1x1x32xf32> to vector<1x32xf32>
    %162 = vector.broadcast %161 : vector<1x32xf32> to vector<8x32xf32>
    %163 = arith.addf %159, %162 : vector<8x32xf32>
    %c0_89 = arith.constant 0 : index
    %c0_90 = arith.constant 0 : index
    %164 = vector.load %arg23[%c0_89, %c0_90] : memref<8x32xf32, #tpu.memory_space<vmem>>, vector<8x32xf32>
    tpu.vector_store %arg23[%c0_89, %c0_90], %163 {strides = array<i32>} : memref<8x32xf32, #tpu.memory_space<vmem>>, vector<8x32xf32>,
    %c1_i32 = arith.constant 1 : i32
    %165 = arith.cmpi eq, %arg1, %c1_i32 : i32
    %166 = arith.extui %165 : i1 to i32
    %c0_i32_91 = arith.constant 0 : i32
    %167 = arith.cmpi ne, %166, %c0_i32_91 : i32
    scf.if %167 {
      %c0_92 = arith.constant 0 : index
      %c0_93 = arith.constant 0 : index
      %168 = vector.load %arg23[%c0_92, %c0_93] : memref<8x32xf32, #tpu.memory_space<vmem>>, vector<8x32xf32>
      %c0_94 = arith.constant 0 : index
      %c0_95 = arith.constant 0 : index
      %c0_96 = arith.constant 0 : index
      %169 = vector.load %arg18[%c0_94, %c0_95, %c0_96] : memref<1x1x32xf32, #tpu.memory_space<vmem>>, vector<1x1x32xf32>
      %170 = vector.shape_cast %169 : vector<1x1x32xf32> to vector<1x32xf32>
      %c0_97 = arith.constant 0 : index
      %c0_98 = arith.constant 0 : index
      %c0_99 = arith.constant 0 : index
      %171 = vector.load %arg19[%c0_97, %c0_98, %c0_99] : memref<1x1x32xf32, #tpu.memory_space<vmem>>, vector<1x1x32xf32>
      %172 = vector.shape_cast %171 : vector<1x1x32xf32> to vector<1x32xf32>
      %cst_100 = arith.constant dense<0.000000e+00> : vector<8xf32>
      %173 = vector.multi_reduction <add>, %168, %cst_100 [1] : vector<8x32xf32> to vector<8xf32>
      %174 = vector.shape_cast %173 : vector<8xf32> to vector<8x1xf32>
      %cst_101 = arith.constant 3.200000e+01 : f32
      %175 = vector.broadcast %cst_101 : f32 to vector<8x1xf32>
      %176 = arith.divf %174, %175 : vector<8x1xf32>
      %177 = vector.broadcast %176 : vector<8x1xf32> to vector<8x32xf32>
      %178 = arith.subf %168, %177 : vector<8x32xf32>
      %179 = arith.mulf %178, %178 : vector<8x32xf32>
      %cst_102 = arith.constant dense<0.000000e+00> : vector<8xf32>
      %180 = vector.multi_reduction <add>, %179, %cst_102 [1] : vector<8x32xf32> to vector<8xf32>
      %181 = vector.shape_cast %180 : vector<8xf32> to vector<8x1xf32>
      %cst_103 = arith.constant 3.200000e+01 : f32
      %182 = vector.broadcast %cst_103 : f32 to vector<8x1xf32>
      %183 = arith.divf %181, %182 : vector<8x1xf32>
      %184 = vector.broadcast %176 : vector<8x1xf32> to vector<8x32xf32>
      %185 = arith.subf %168, %184 : vector<8x32xf32>
      %cst_104 = arith.constant 9.99999974E-6 : f32
      %186 = vector.broadcast %cst_104 : f32 to vector<8x1xf32>
      %187 = arith.addf %183, %186 : vector<8x1xf32>
      %188 = math.rsqrt %187 : vector<8x1xf32>
      %189 = vector.broadcast %188 : vector<8x1xf32> to vector<8x32xf32>
      %190 = arith.mulf %185, %189 : vector<8x32xf32>
      %191 = vector.broadcast %170 : vector<1x32xf32> to vector<8x32xf32>
      %192 = arith.mulf %190, %191 : vector<8x32xf32>
      %193 = vector.broadcast %172 : vector<1x32xf32> to vector<8x32xf32>
      %194 = arith.addf %192, %193 : vector<8x32xf32>
      %c0_105 = arith.constant 0 : index
      %c0_106 = arith.constant 0 : index
      %195 = vector.load %arg3[%c0_105, %c0_106] : memref<2x8xf32, #tpu.memory_space<vmem>>, vector<2x8xf32>
      %cst_107 = arith.constant dense<0.000000e+00> : vector<2x32xf32>
      %196 = tpu.matmul %195, %194, %cst_107 {dimension_numbers = #tpu.dot_dimension_numbers<[1], [0], [0], [1], [0, 0, 1, 1], [], []>} : vector<2x8xf32>, vector<8x32xf32>, vector<2x32xf32> -> vector<2x32xf32>
      %c0_108 = arith.constant 0 : index
      %c0_109 = arith.constant 0 : index
      %c0_110 = arith.constant 0 : index
      %197 = vector.load %arg20[%c0_108, %c0_109, %c0_110] : memref<1x32x2xbf16, #tpu.memory_space<vmem>>, vector<1x32x2xbf16>
      %198 = vector.shape_cast %197 : vector<1x32x2xbf16> to vector<32x2xbf16>
      %199 = arith.truncf %196 : vector<2x32xf32> to vector<2x32xbf16>
      %cst_111 = arith.constant dense<0.000000e+00> : vector<2x2xf32>
      %200 = tpu.matmul %199, %198, %cst_111 {dimension_numbers = #tpu.dot_dimension_numbers<[1], [0], [0], [1], [0, 0, 1, 1], [], []>} : vector<2x32xbf16>, vector<32x2xbf16>, vector<2x2xf32> -> vector<2x2xf32>
      %c0_112 = arith.constant 0 : index
      %c0_113 = arith.constant 0 : index
      %c0_114 = arith.constant 0 : index
      %201 = vector.load %arg21[%c0_112, %c0_113, %c0_114] : memref<1x1x2xf32, #tpu.memory_space<vmem>>, vector<1x1x2xf32>
      %202 = vector.shape_cast %201 : vector<1x1x2xf32> to vector<1x2xf32>
      %203 = vector.broadcast %202 : vector<1x2xf32> to vector<2x2xf32>
      %204 = arith.addf %200, %203 : vector<2x2xf32>
      %c0_115 = arith.constant 0 : index
      %c0_116 = arith.constant 0 : index
      %c0_117 = arith.constant 0 : index
      %205 = vector.load %arg22[%c0_115, %c0_116, %c0_117] : memref<1x2x2xf32, #tpu.memory_space<vmem>>, vector<1x2x2xf32>
      %206 = vector.shape_cast %205 : vector<1x2x2xf32> to vector<2x2xf32>
      %207 = vector.shape_cast %204 : vector<2x2xf32> to vector<1x2x2xf32>
      tpu.vector_store %arg22[%c0_115, %c0_116, %c0_117], %207 {strides = array<i32>} : memref<1x2x2xf32, #tpu.memory_space<vmem>>, vector<1x2x2xf32>,
    } else {
    }
    return
  }
  func.func @transform_0(%arg0: i32, %arg1: i32) -> (i32, i32, i32) {
    %c0_i32 = arith.constant 0 : i32
    %c0_i32_0 = arith.constant 0 : i32
    %c0_i32_1 = arith.constant 0 : i32
    return %arg0, %c0_i32, %c0_i32_0 : i32, i32, i32
  }
  func.func @transform_1(%arg0: i32, %arg1: i32) -> (i32, i32) {
    %c0_i32 = arith.constant 0 : i32
    %c0_i32_0 = arith.constant 0 : i32
    %c0_i32_1 = arith.constant 0 : i32
    return %c0_i32, %c0_i32_0 : i32, i32
  }
  func.func @transform_2(%arg0: i32, %arg1: i32) -> (i32, i32, i32) {
    %c0_i32 = arith.constant 0 : i32
    %c0_i32_0 = arith.constant 0 : i32
    %c0_i32_1 = arith.constant 0 : i32
    return %arg0, %c0_i32, %c0_i32_0 : i32, i32, i32
  }
  func.func @transform_3(%arg0: i32, %arg1: i32) -> (i32, i32, i32) {
    %c0_i32 = arith.constant 0 : i32
    %c0_i32_0 = arith.constant 0 : i32
    %c0_i32_1 = arith.constant 0 : i32
    return %arg0, %c0_i32, %c0_i32_0 : i32, i32, i32
  }
  func.func @transform_4(%arg0: i32, %arg1: i32) -> (i32, i32, i32, i32) {
    %c0_i32 = arith.constant 0 : i32
    %c0_i32_0 = arith.constant 0 : i32
    %c0_i32_1 = arith.constant 0 : i32
    return %arg0, %arg1, %c0_i32, %c0_i32_0 : i32, i32, i32, i32
  }
  func.func @transform_5(%arg0: i32, %arg1: i32) -> (i32, i32, i32, i32) {
    %c0_i32 = arith.constant 0 : i32
    %c0_i32_0 = arith.constant 0 : i32
    %c0_i32_1 = arith.constant 0 : i32
    return %arg0, %arg1, %c0_i32, %c0_i32_0 : i32, i32, i32, i32
  }
  func.func @transform_6(%arg0: i32, %arg1: i32) -> (i32, i32, i32, i32) {
    %c0_i32 = arith.constant 0 : i32
    %c0_i32_0 = arith.constant 0 : i32
    %c0_i32_1 = arith.constant 0 : i32
    return %arg0, %arg1, %c0_i32, %c0_i32_0 : i32, i32, i32, i32
  }
  func.func @transform_7(%arg0: i32, %arg1: i32) -> (i32, i32, i32, i32) {
    %c0_i32 = arith.constant 0 : i32
    %c0_i32_0 = arith.constant 0 : i32
    %c0_i32_1 = arith.constant 0 : i32
    return %arg0, %arg1, %c0_i32, %c0_i32_0 : i32, i32, i32, i32
  }
  func.func @transform_8(%arg0: i32, %arg1: i32) -> (i32, i32, i32, i32) {
    %c0_i32 = arith.constant 0 : i32
    %c0_i32_0 = arith.constant 0 : i32
    %c0_i32_1 = arith.constant 0 : i32
    return %arg0, %arg1, %c0_i32, %c0_i32_0 : i32, i32, i32, i32
  }
  func.func @transform_9(%arg0: i32, %arg1: i32) -> (i32, i32, i32, i32) {
    %c0_i32 = arith.constant 0 : i32
    %c0_i32_0 = arith.constant 0 : i32
    %c0_i32_1 = arith.constant 0 : i32
    return %arg0, %arg1, %c0_i32, %c0_i32_0 : i32, i32, i32, i32
  }
  func.func @transform_10(%arg0: i32, %arg1: i32) -> (i32, i32, i32, i32) {
    %c0_i32 = arith.constant 0 : i32
    %c0_i32_0 = arith.constant 0 : i32
    %c0_i32_1 = arith.constant 0 : i32
    return %arg0, %arg1, %c0_i32, %c0_i32_0 : i32, i32, i32, i32
  }
  func.func @transform_11(%arg0: i32, %arg1: i32) -> (i32, i32, i32, i32) {
    %c0_i32 = arith.constant 0 : i32
    %c0_i32_0 = arith.constant 0 : i32
    %c0_i32_1 = arith.constant 0 : i32
    return %arg0, %arg1, %c0_i32, %c0_i32_0 : i32, i32, i32, i32
  }
  func.func @transform_12(%arg0: i32, %arg1: i32) -> (i32, i32, i32, i32) {
    %c0_i32 = arith.constant 0 : i32
    %c0_i32_0 = arith.constant 0 : i32
    %c0_i32_1 = arith.constant 0 : i32
    return %arg0, %arg1, %c0_i32, %c0_i32_0 : i32, i32, i32, i32
  }
  func.func @transform_13(%arg0: i32, %arg1: i32) -> (i32, i32, i32, i32) {
    %c0_i32 = arith.constant 0 : i32
    %c0_i32_0 = arith.constant 0 : i32
    %c0_i32_1 = arith.constant 0 : i32
    return %arg0, %arg1, %c0_i32, %c0_i32_0 : i32, i32, i32, i32
  }
  func.func @transform_14(%arg0: i32, %arg1: i32) -> (i32, i32, i32, i32) {
    %c0_i32 = arith.constant 0 : i32
    %c0_i32_0 = arith.constant 0 : i32
    %c0_i32_1 = arith.constant 0 : i32
    return %arg0, %arg1, %c0_i32, %c0_i32_0 : i32, i32, i32, i32
  }
  func.func @transform_15(%arg0: i32, %arg1: i32) -> (i32, i32, i32, i32) {
    %c0_i32 = arith.constant 0 : i32
    %c0_i32_0 = arith.constant 0 : i32
    %c0_i32_1 = arith.constant 0 : i32
    return %arg0, %arg1, %c0_i32, %c0_i32_0 : i32, i32, i32, i32
  }
  func.func @transform_16(%arg0: i32, %arg1: i32) -> (i32, i32, i32) {
    %c0_i32 = arith.constant 0 : i32
    %c0_i32_0 = arith.constant 0 : i32
    %c0_i32_1 = arith.constant 0 : i32
    return %arg0, %c0_i32, %c0_i32_0 : i32, i32, i32
  }
  func.func @transform_17(%arg0: i32, %arg1: i32) -> (i32, i32, i32) {
    %c0_i32 = arith.constant 0 : i32
    %c0_i32_0 = arith.constant 0 : i32
    %c0_i32_1 = arith.constant 0 : i32
    return %arg0, %c0_i32, %c0_i32_0 : i32, i32, i32
  }
  func.func @transform_18(%arg0: i32, %arg1: i32) -> (i32, i32, i32) {
    %c0_i32 = arith.constant 0 : i32
    %c0_i32_0 = arith.constant 0 : i32
    %c0_i32_1 = arith.constant 0 : i32
    return %arg0, %c0_i32, %c0_i32_0 : i32, i32, i32
  }
  func.func @transform_19(%arg0: i32, %arg1: i32) -> (i32, i32, i32) {
    %c0_i32 = arith.constant 0 : i32
    %c0_i32_0 = arith.constant 0 : i32
    %c0_i32_1 = arith.constant 0 : i32
    return %arg0, %c0_i32, %c0_i32_0 : i32, i32, i32
  }
  func.func @transform_20(%arg0: i32, %arg1: i32) -> (i32, i32, i32) {
    %c0_i32 = arith.constant 0 : i32
    %c0_i32_0 = arith.constant 0 : i32
    %c0_i32_1 = arith.constant 0 : i32
    return %arg0, %c0_i32, %c0_i32_0 : i32, i32, i32
  }
}

</mosaic_0001>

<bundles_post_ra>
// kernel: _lambda_.1
= control target key start
LH: loop header
LB: loop body
LE: loop exit
PB: predicated region body
PF: predicated region fallthrough
CT: control target
= control target key end

     0   :  { %s2615_s22 = smov 0   ;;  %s2617_s23 = smov 0   ;;  %s2898_s0 = inlined_call_operand.vmem [shape: f32[2,8,192], index: 0, kind: input, shape index: {}]   ;;  %s2899_s1 = inlined_call_operand.vmem [shape: f32[2,8], index: 1, kind: input, shape index: {}]   ;;  %s2900_s2 = inlined_call_operand.vmem [shape: bf16[2,192,32], index: 2, kind: input, shape index: {}]   ;;  %s2901_s3 = inlined_call_operand.vmem [shape: f32[2,1,32], index: 3, kind: input, shape index: {}]   ;;  %s2902_s4 = inlined_call_operand.vmem [shape: f32[2,2,1,32], index: 4, kind: input, shape index: {}]   ;;  %s2903_s5 = inlined_call_operand.vmem [shape: f32[2,2,1,32], index: 5, kind: input, shape index: {}]   ;;  %s2904_s6 = inlined_call_operand.vmem [shape: bf16[2,2,8,4], index: 6, kind: input, shape index: {}]   ;;  %s2905_s7 = inlined_call_operand.vmem [shape: f32[2,2,8,1], index: 7, kind: input, shape index: {}]   ;;  %s2906_s8 = inlined_call_operand.vmem [shape: bf16[2,2,4,8], index: 8, kind: input, shape index: {}]   ;;  %s2907_s9 = inlined_call_operand.vmem [shape: f32[2,2,4,1], index: 9, kind: input, shape index: {}]   ;;  %s2908_s10 = inlined_call_operand.vmem [shape: f32[2,2,1,32], index: 10, kind: input, shape index: {}]   ;;  %s2909_s11 = inlined_call_operand.vmem [shape: f32[2,2,1,32], index: 11, kind: input, shape index: {}]   ;;  %s2910_s12 = inlined_call_operand.vmem [shape: bf16[2,2,32,64], index: 12, kind: input, shape index: {}]   ;;  %s2911_s13 = inlined_call_operand.vmem [shape: f32[2,2,1,64], index: 13, kind: input, shape index: {}]   ;;  %s2912_s14 = inlined_call_operand.vmem [shape: bf16[2,2,64,32], index: 14, kind: input, shape index: {}]   ;;  %s2913_s15 = inlined_call_operand.vmem [shape: f32[2,2,1,32], index: 15, kind: input, shape index: {}]   ;;  %s2914_s16 = inlined_call_operand.vmem [shape: f32[2,1,32], index: 16, kind: input, shape index: {}]   ;;  %s2915_s17 = inlined_call_operand.vmem [shape: f32[2,1,32], index: 17, kind: input, shape index: {}]   ;;  %s2916_s18 = inlined_call_operand.vmem [shape: bf16[2,32,2], index: 18, kind: input, shape index: {}]   ;;  %s2917_s19 = inlined_call_operand.vmem [shape: f32[2,1,2], index: 19, kind: input, shape index: {}]   ;;  %s2918_s20 = inlined_call_operand.vmem [shape: f32[2,2,2], index: 20, kind: output, shape index: {}]  }
   0x1   :  { %2925 = sst [smem:[#allocation12_spill]] %s2898_s0  ;;  %s2619_s24 = smov 0  }
   0x2   :  { %2926 = sst [smem:[#allocation13_spill]] %s2899_s1  ;;  %s2613_s1 = smov 0  }
   0x3   :  { %2927 = sst [smem:[#allocation14_spill]] %s2900_s2  ;;  %s2621_s2 = smov 0  }
   0x4   :  { %2928 = sst [smem:[#allocation15_spill]] %s2901_s3 }
   0x5   :  { %2929 = sst [smem:[#allocation16_spill]] %s2902_s4 }
   0x6   :  { %2930 = sst [smem:[#allocation17_spill]] %s2904_s6 }
   0x7   :  { %2931 = sst [smem:[#allocation18_spill]] %s2905_s7 }
   0x8   :  { %2932 = sst [smem:[#allocation19_spill]] %s2906_s8 }
   0x9   :  { %2933 = sst [smem:[#allocation20_spill]] %s2907_s9 }
   0xa   :  { %2934 = sst [smem:[#allocation21_spill]] %s2908_s10 }
   0xb   :  { %2935 = sst [smem:[#allocation22_spill]] %s2910_s12 }
   0xc   :  { %2936 = sst [smem:[#allocation23_spill]] %s2911_s13 }
   0xd   :  { %2937 = sst [smem:[#allocation24_spill]] %s2912_s14 }
   0xe   :  { %2938 = sst [smem:[#allocation25_spill]] %s2913_s15 }
   0xf   :  { %2939 = sst [smem:[#allocation26_spill]] %s2914_s16 }
  0x10   :  { %2940 = sst [smem:[#allocation27_spill]] %s2915_s17 }
  0x11   :  { %2941 = sst [smem:[#allocation28_spill]] %s2916_s18 }
  0x12   :  { %2942 = sst [smem:[#allocation29_spill]] %s2917_s19 }
  0x13   :  { %2943 = sst [smem:[#allocation30_spill]] %s2918_s20 }
  0x14 LB: > { %2944 = sst [smem:[#allocation3_spill]] %s2484_s1  ;;  %s39_s25 = sadd.s32 1, %s2492_s23  ;;  %s2500_s2 = sphi %s2621_s2, %s30_s2   ;;  %s2496_s24 = sphi %s2619_s24, %s2996_s24   ;;  %s2492_s23 = sphi %s2617_s23, %s2995_s23   ;;  %s2488_s22 = sphi %s2615_s22, %s2994_s22   ;;  %s2484_s1 = sphi %s2613_s1, %s2993_s1  }
  0x15   : > { %2945 = sst [smem:[#allocation4_spill]] %s2492_s23  ;;  %s42_s3 = sadd.s32 1, %s2496_s24 }
  0x16   : > { %2946 = sst [smem:[#allocation5_spill]] %s2496_s24  ;;  %p40_p0 = scmp.ge.s32.totalorder %s39_s25, 2 }
  0x17   : > { %2947 = sst [smem:[#allocation6_spill]] %s2500_s2  ;;  %p2229_p1 = scmp.ge.s32.totalorder %s2500_s2, 1 }
  0x18   : > { %p802_p2 = scmp.lt.s32.totalorder %s2500_s2, 5  ;;  %s2998_s25 = smov (%p40_p0, %s39_s25), 0 }
  0x19   : > { %2948 = sst [smem:[#allocation7_spill]] %s2998_s25  ;;  %s3000_s3 = smov (!%p40_p0, %s42_s3), %s2496_s24 }
  0x1a   : > { %p803_p3 = pnand %p2229_p1, %p802_p2  ;;  %p44_p4 = scmp.ge.s32.totalorder %s3000_s3, 2 }
  0x1c   : > { %s3002_s3 = smov (%p44_p4, %s3000_s3), 0  ;;  %806 = sbr.rel (%p803_p3) target bundleno = 2662 (0xa66), region = 100 }
  0x1d   : > { %2949 = sst [smem:[#allocation8_spill]] %s3002_s3 }
  0x23   : > { %p973_p5 = scmp.lt.s32.totalorder %s2488_s22, 1  ;;  %p988_p6 = scmp.lt.s32.totalorder %s2484_s1, 1 }
  0x24   : > { %s2950_s30 = sld [smem:[#allocation12_spill]]  ;;  %s2953_s20 = sld [smem:[#allocation14_spill]] }
  0x25   : > { %s3004_s22 = smov (!%p973_p5, %s2488_s22), 1  ;;  %s2956_s6 = sld [smem:[#allocation17_spill]] }
  0x26   : > { %s989_s26 = scalar_select %p988_p6, %s2484_s1, 1 }
  0x27   : > { %s2650_s27 = sshll.u32 %s3004_s22, 4  ;;  %s2379_s28 = smul.u32 96, %s3004_s22 }
  0x28   : > { %s2233_s1 = sshll.u32 %s3004_s22, 1  ;;  %s2245_s4 = sshll.u32 %s989_s26, 2 }
  0x29   : > { %s2669_s18 = sadd.s32 %s2233_s1, %s989_s26  ;;  %s2957_s7 = sld [smem:[#allocation18_spill]] }
  0x2a   : > { %s2657_s0 = scalar_lea.vmem %s2950_s30, %s2650_s27  ;;  %s2666_s19 = scalar_lea.vmem %s2953_s20, %s2379_s28 }
  0x2b   : > { %2951 = sst [smem:[#allocation9_spill]] %s2657_s0  ;;  %s2236_s28 = sshll.u32 %s2669_s18, 2 }
  0x2c   : > { %2954 = sst [smem:[#allocation10_spill]] %s2666_s19  ;;  %s2238_s21 = sshll.u32 %s2669_s18, 3 }
  0x2d   : > { %s2684_s19 = scalar_lea.vmem %s2956_s6, %s2236_s28  ;;  %s2240_s3 = sshll.u32 %s2669_s18, 1 }
  0x2e   : > { %s2958_s9 = sld [smem:[#allocation20_spill]]  ;;  %s2960_s8 = sld [smem:[#allocation19_spill]] }
  0x2f   : > { %s2689_s14 = scalar_lea.vmem %s2957_s7, %s2238_s21  ;;  %s2246_s7 = sshll.u32 %s3004_s22, 3 }
  0x30   : > { %s1052_s25 = sadd.s32 %s2246_s7, %s2245_s4  ;;  %s2249_s20 = sshll.u32 %s989_s26, 3 }
  0x31   : > { %s2963_s12 = sld [smem:[#allocation22_spill]]  ;;  %s1068_s30 = sadd.s32 %s2650_s27, %s2249_s20 }
  0x32   : > { %s2251_s0 = sshll.u32 %s1068_s30, 2  ;;  %s2965_s7 = sld [smem:[#allocation24_spill]] }
  0x33   : > { %s2967_s2 = sld [smem:[#allocation27_spill]]  ;;  %s2968_s30 = sld [smem:[#allocation28_spill]] }
  0x34   : > { %s2695_s23 = scalar_lea.vmem %s2958_s9, %s2236_s28  ;;  %s2700_s24 = scalar_lea.vmem %s2960_s8, %s2240_s3 }
  0x35   : > { %2959 = sst [smem:[#allocation11_spill]] %s2695_s23  ;;  %s2247_s23 = sshll.u32 %s1052_s25, 2 }
  0x36   : > { %s2966_s25 = sld [smem:[#allocation26_spill]]  ;;  %s2969_s17 = sld [smem:[#allocation29_spill]] }
  0x37   : > { %s2718_s8 = scalar_lea.vmem %s2963_s12, %s2247_s23  ;;  %s2970_s21 = sld [smem:[#allocation30_spill]] }
  0x38   : > { %s2728_s4 = scalar_lea.vmem %s2965_s7, %s2251_s0  ;;  %s2971_s29 = sld [smem:[#allocation3_spill]] }
  0x39   : > { %s1083_s23 = scalar_lea.vmem %s2967_s2, %s3004_s22  ;;  %s2742_s12 = scalar_lea.vmem %s2968_s30, %s2650_s27 }
  0x3c   : > { %s1080_s26 = scalar_lea.vmem %s2966_s25, %s3004_s22  ;;  %s1091_s15 = scalar_lea.vmem %s2969_s17, %s3004_s22 }
  0x3d   : > { %s2751_s7 = scalar_lea.vmem %s2970_s21, %s2233_s1 }
  0x3e   : > { %p2256_p7 = scmp.ne.s32.totalorder %s2971_s29, 0 }
  0x3f   : > { %s2972_s28 = sld [smem:[#allocation10_spill]] (!%p2256_p7)  ;;  %s2973_s9 = sld [smem:[#allocation9_spill]] (!%p2256_p7)  ;;  %v2502_v1 = vmov (!%p2256_p7), 0   ;;  %vm1208_vm0 = vcmask (!%p2256_p7), 523264   ;;  %vm1252_vm1 = vcmask (!%p2256_p7), 261120  }
  0x40   : > { %1100 = sbr.rel (%p2256_p7) target bundleno = 332 (0x14c), region = 104  ;;  %1212 = vmatprep.subr.bf16.mxu0 (!%p2256_p7), %v2502_v1  ;;  %s2974_s27 = sld [smem:[#allocation15_spill]] (!%p2256_p7) }
  0x45   : > { %v2426_v0 = vld [vmem:[%s2972_s28] sm:$0xff] (!%p2256_p7)   ;;  %v2427_v2 = vld [vmem:[%s2972_s28 + $0x8] sm:$0xff] (!%p2256_p7)   ;;  %v2428_v3 = vld [vmem:[%s2972_s28 + $0x10] sm:$0xff] (!%p2256_p7)  }
  0x46   : > { %1213 = vmatpush1.bf16.msra.mxu0 (!%p2256_p7), %v2426_v0  ;;  %v2429_v4 = vld [vmem:[%s2972_s28 + $0x18] sm:$0xff] (!%p2256_p7)   ;;  %v1102_v5 = vld [vmem:[%s2973_s9 + $0x8] sm:$0xff] (!%p2256_p7)  ;;  %v2430_v7 = vld [vmem:[%s2972_s28 + $0x20] sm:$0xff] (!%p2256_p7)   ;;  %s2975_s17 = scalar_lea.vmem (!%p2256_p7), %s2974_s27, %s3004_s22 }
  0x47   : > { %1214 = vmatprep.subr.bf16.mxu0 %v2502_v1  ;;  %v1128_v6 = vpack.c.bf16 %v1102_v5, %v1102_v5  ;;  %v2431_v8 = vld [vmem:[%s2972_s28 + $0x28] sm:$0xff]   ;;  %v2432_v9 = vld [vmem:[%s2972_s28 + $0x30] sm:$0xff]   ;;  %v2433_v10 = vld [vmem:[%s2972_s28 + $0x38] sm:$0xff]  }
  0x48   : > { %v2434_v11 = vld [vmem:[%s2972_s28 + $0x40] sm:$0xff]   ;;  %v2435_v12 = vld [vmem:[%s2972_s28 + $0x48] sm:$0xff]   ;;  %v2436_v13 = vld [vmem:[%s2972_s28 + $0x50] sm:$0xff]  }
  0x49   : > { %2270 = vmatprep.mubr.msk.bf16.mxu0 %vm1208_vm0, %v1128_v6  ;;  %v2437_v14 = vld [vmem:[%s2972_s28 + $0x58] sm:$0xff]   ;;  %v1101_v15 = vld [vmem:[%s2973_s9] sm:$0xff] }
  0x4a   : > { %1215 = vmatpush1.bf16.msra.mxu0 %v2427_v2  ;;  %v1127_v16 = vpack.c.bf16 %v1101_v15, %v1101_v15  ;;  %v2257_v17 = vld [vmem:[%s2975_s17] ss:$0 sm:$0xff] }
  0x4b   : > { %1216 = vmatprep.subr.bf16.mxu0 %v2502_v1 }
  0x4e   : > { %1217 = vmatpush1.bf16.msra.mxu0 %v2428_v3 }
  0x4f   : > { %1218 = vmatprep.subr.bf16.mxu0 %v2502_v1 }
  0x52   : > { %1219 = vmatpush1.bf16.msra.mxu0 %v2429_v4 }
  0x53   : > { %1220 = vmatprep.subr.bf16.mxu0 %v2502_v1 }
  0x56   : > { %1221 = vmatpush1.bf16.msra.mxu0 %v2430_v7 }
  0x57   : > { %1222 = vmatprep.subr.bf16.mxu0 %v2502_v1 }
  0x5a   : > { %1223 = vmatpush1.bf16.msra.mxu0 %v2431_v8 }
  0x5b   : > { %1224 = vmatprep.subr.bf16.mxu0 %v2502_v1 }
  0x5e   : > { %1225 = vmatpush1.bf16.msra.mxu0 %v2432_v9 }
  0x5f   : > { %1226 = vmatprep.subr.bf16.mxu0 %v2502_v1 }
  0x62   : > { %1227 = vmatpush1.bf16.msra.mxu0 %v2433_v10 }
  0x63   : > { %1228 = vmatprep.subr.bf16.mxu0 %v2502_v1 }
  0x66   : > { %1229 = vmatpush1.bf16.msra.mxu0 %v2434_v11 }
  0x67   : > { %1230 = vmatprep.subr.bf16.mxu0 %v2502_v1 }
  0x6a   : > { %1231 = vmatpush1.bf16.msra.mxu0 %v2435_v12 }
  0x6b   : > { %1232 = vmatprep.subr.bf16.mxu0 %v2502_v1 }
  0x6e   : > { %1233 = vmatpush1.bf16.msra.mxu0 %v2436_v13 }
  0x6f   : > { %1234 = vmatprep.subr.bf16.mxu0 %v2502_v1 }
  0x72   : > { %1235 = vmatpush1.bf16.msra.mxu0 %v2437_v14 }
  0x75   : > { %1245 = vmatmul.mubr.bf16.vlgmr.msra.gmra.mrb[0].mxu0 %v1127_v16 }
 0x148   : > { %v1246_v18 = vpop.f32.mrb[0].mxu0 }
 0x149   : > { %v1247_v19 = vadd.f32 %v2257_v17, %v1246_v18  ;;  %v1248_v20 = vpop.f32.mrb[1].mxu0 }
 0x14a   : > { %v1249_v21 = vpop.f32.mrb[2].mxu0 }
 0x14b   : > { %1253 = vst.msk [vmem:[#allocation2] sm:$0xff] %vm1252_vm1, %v1247_v19  ;;  %v1250_v22 = vpop.f32.mrb[3].mxu0 }
 0x14c PF: > { %vm1261_vm2 = vcmask 257024   ;;  %v2503_v37 = vmov 0.0   ;;  %vm2504_vm3 = vmmov 0   ;;  %v1257_v38 = vld [vmem:[%s2689_s14] sm:$0xff]  ;;  %v2505_v39 = vmov 0   ;;  %s2976_s3 = sld [smem:[#allocation16_spill]]  ;;  %s2978_s10 = scalar_lea.vmem %s2903_s5, %s2669_s18 }
 0x14d   : > { %2322 = vmatprep.subr.bf16.mxu0 %v2503_v37  ;;  %2328 = vmatprep.subr.bf16.mxu1 %v2503_v37  ;;  %v2272_v49 = vld [vmem:[%s2978_s10] ss:$0 sm:$0xff]  ;;  %vm1300_vm4 = vcmask 1041408   ;;  %s2979_s16 = sld [smem:[#allocation11_spill]]  ;;  %vm1296_vm5 = vcmask 31744   ;;  %vm1358_vm6 = vcmask 1043456   ;;  %s2982_s28 = scalar_lea.vmem %s2909_s11, %s2669_s18 }
 0x14e   : > { %2324 = vmatprep.mubr.msk.bf16.mxu0 %vm2504_vm3, %v2503_v37  ;;  %2330 = vmatprep.mubr.msk.bf16.mxu1 %vm2504_vm3, %v2503_v37  ;;  %v1256_v58 = vld [vmem:[%s2684_s19] sm:$0xf]  ;;  %vm1354_vm7 = vcmask 64512   ;;  %vm1529_vm8 = vcmask 261120   ;;  %s2980_s6 = sld [smem:[#allocation21_spill]]  ;;  %s2983_s13 = sld [smem:[#allocation23_spill]] }
 0x14f   : > { %2438 = vset.pattern.permute.xlu0 %v2505_v39  ;;  %2439 = vset.pattern.permute.xlu1 %v2505_v39  ;;  %vm1666_vm9 = vcmask 523264   ;;  %s2985_s17 = sld [smem:[#allocation25_spill]]  ;;  %s2987_s2 = sld [smem:[#allocation3_spill]] }
 0x152   : > { %v2773_v23 = vld [vmem:[#allocation2] sm:$0xf]  ;;  %v2775_v24 = vld [vmem:[#allocation2 + $0x4] sm:$0xf]  ;;  %s2977_s20 = scalar_lea.vmem %s2976_s3, %s2669_s18 }
 0x153   : > { %v1262_v25 = vsel %vm1261_vm2, %v2773_v23, 0.0  ;;  %v1411_v26 = vsel %vm1261_vm2, %v2775_v24, 0.0  ;;  %v2271_v47 = vld [vmem:[%s2977_s20] ss:$0 sm:$0xff] }
 0x154   : > { %1263 = vadd.xlane.f32.xlu0 %v1262_v25  ;;  %v1259_v61 = vld [vmem:[%s2979_s16] sm:$0xf]  ;;  %s2981_s0 = scalar_lea.vmem %s2980_s6, %s2669_s18  ;;  %s2984_s1 = scalar_lea.vmem %s2983_s13, %s2669_s18 }
 0x155   : > { %s2986_s25 = scalar_lea.vmem %s2985_s17, %s2669_s18  ;;  %p2289_p8 = scmp.ne.s32.totalorder %s2987_s2, 1 }
 0x156   : > { %vm2507_vm10 = vmmov (!%p2289_p8), 0   ;;  %vm1895_vm11 = vcmask (!%p2289_p8), 9216  }
 0x158   : > { %1412 = vadd.xlane.f32.xlu0 %v1411_v26 }
 0x16e   : > { %1293 = vperm.xlu0 %2438, %v1257_v38  }
 0x1e1   : > { %v1264_v27 = vpop.xlane.xlu0 %1263 }
 0x1e2   : > { %v1266_v28 = vmul.f32 0.03125, %v1264_v27 }
 0x1e4   : > { %v1267_v29 = vsub.f32 %v2773_v23, %v1266_v28 }
 0x1e5   : > { %v1413_v30 = vpop.xlane.xlu0 %1412 }
 0x1e6   : > { %v1414_v31 = vmul.f32 0.03125, %v1413_v30  ;;  %v1268_v32 = vmul.f32 %v1267_v29, %v1267_v29 }
 0x1e8   : > { %v1415_v33 = vsub.f32 %v2775_v24, %v1414_v31  ;;  %v1269_v34 = vsel %vm1261_vm2, %v1268_v32, 0.0 }
 0x1e9   : > { %1270 = vadd.xlane.f32.xlu1 %v1269_v34 }
 0x1ea   : > { %v1416_v35 = vmul.f32 %v1415_v33, %v1415_v33 }
 0x1ec   : > { %v1417_v36 = vsel %vm1261_vm2, %v1416_v35, 0.0 }
 0x1ed   : > { %1418 = vadd.xlane.f32.xlu1 %v1417_v36  ;;  %v1294_v62 = vpop.permute.xlu0 %1293 }
 0x1fe   : > { %1405 = vperm.xlu1 %2439, %v1259_v61   ;;  %v2278_v61 = vld [vmem:[%s2982_s28] ss:$0 sm:$0xff] }
 0x276   : > { %v1271_v40 = vpop.xlane.xlu1 %1270 }
 0x277   : > { %v1272_v41 = vmul.f32 0.03125, %v1271_v40 }
 0x279   : > { %v1273_v42 = vadd.f32 1e-05, %v1272_v41 }
 0x27a   : > { %v1419_v43 = vpop.xlane.xlu1 %1418 }
 0x27b   : > { %2446 = vrsqrt.f32 %v1273_v42  ;;  %v1420_v44 = vmul.f32 0.03125, %v1419_v43 }
 0x27d   : > { %v1421_v45 = vadd.f32 1e-05, %v1420_v44 }
 0x27e   : > { %v1406_v35 = vpop.permute.xlu1 %1405 }
 0x27f   : > { %2448 = vrsqrt.f32 %v1421_v45 }
 0x285   : > { %v2447_v46 = vpop.eup %2446 }
 0x286   : > { %v1275_v48 = vmul.f32 %v2447_v46, %v1267_v29  ;;  %v1258_v29 = vld [vmem:[%s2700_s24] sm:$0x3]  ;;  %s2990_s24 = sld [smem:[#allocation13_spill]] (!%p2289_p8) }
 0x288   : > { %v1282_v50 = vmul.f32 %v2271_v47, %v1275_v48 }
 0x289   : > { %v2449_v51 = vpop.eup %2448 }
 0x28a   : > { %v1289_v52 = vadd.f32 %v2272_v49, %v1282_v50  ;;  %v1423_v53 = vmul.f32 %v2449_v51, %v1415_v33 }
 0x28c   : > { %v1290_v54 = vpack.c.bf16 %v1289_v52, %v1289_v52  ;;  %v1424_v55 = vmul.f32 %v2271_v47, %v1423_v53  ;;  %v2440_v53 = vld [vmem:[%s2718_s8] sm:$0xff]  }
 0x28e   : > { %v1302_v56 = vsel %vm1300_vm4, %v1290_v54, 0  ;;  %v1425_v57 = vadd.f32 %v2272_v49, %v1424_v55  ;;  %v2441_v54 = vld [vmem:[%s2718_s8 + $0x8] sm:$0xff]  }
 0x28f   : > { %2323 = vmatpush3.bf16.msra.mxu0 %v1302_v56 }
 0x290   : > { %v1426_v59 = vpack.c.bf16 %v1425_v57, %v1425_v57  ;;  %2334 = vmatprep.subr.bf16.mxu0 %v2503_v37 }
 0x292   : > { %v1428_v60 = vsel %vm1300_vm4, %v1426_v59, 0  ;;  %2325 = vmatmul.mubr.msk.bf16.vlgmr.msra.gmra.mrb[0].mxu0 %vm1296_vm5, %v1256_v58  ;;  %v2277_v59 = vld [vmem:[%s2981_s0] ss:$0 sm:$0xff] }
 0x293   : > { %2335 = vmatpush3.bf16.msra.mxu0 %v1428_v60  ;;  %2336 = vmatprep.mubr.msk.bf16.mxu0 %vm2504_vm3, %v2503_v37 }
 0x294   : > { %2346 = vmatprep.subr.bf16.mxu0 %v2503_v37 }
 0x29a   : > { %2337 = vmatmul.mubr.msk.bf16.vlgmr.msra.gmra.mrb[4].mxu0 %vm1296_vm5, %v1256_v58 }
 0x29b   : > { %2350 = vmatprep.mubr.msk.bf16.mxu0 %vm2504_vm3, %v2503_v37  ;;  %2347 = vmatpush3.bf16.msra.mxu0 %v2440_v53 }
 0x29c   : > { %2348 = vmatprep.subr.bf16.mxu0 %v2503_v37 }
 0x29f   : > { %2349 = vmatpush3.bf16.msra.mxu0 %v2441_v54 }
 0x365   : > { %v1338_v63 = vpop.f32.mrb[0].mxu0 }
 0x366   : > { %v1339_v0 = vadd.f32 %v1338_v63, %v1294_v62  ;;  %v2326_v1 = vpop.f32.mrb[1].mxu0 }
 0x367   : > { %v1341_v2 = vpop.f32.mrb[2].mxu0  ;;  %v2442_v1 = vld [vmem:[%s2728_s4] sm:$0xff]  }
 0x368   : > { %v1344_v3 = vmul.f32 %v1339_v0, %v1339_v0  ;;  %v2327_v4 = vpop.f32.mrb[3].mxu0  ;;  %v2443_v2 = vld [vmem:[%s2728_s4 + $0x8] sm:$0xff]  }
 0x369   : > { %v2445_v4 = vld [vmem:[%s2728_s4 + $0x18] sm:$0xff]  }
 0x36a   : > { %v1345_v5 = vmul.f32 %v1344_v3, %v1339_v0  ;;  %v2444_v3 = vld [vmem:[%s2728_s4 + $0x10] sm:$0xff]  }
 0x36c   : > { %v1346_v6 = vmul.f32 0.044715, %v1345_v5  ;;  %v2279_v5 = vld [vmem:[%s2984_s1] ss:$0 sm:$0xff] }
 0x36d   : > { %v1464_v7 = vpop.f32.mrb[4].mxu0 }
 0x36e   : > { %v1347_v8 = vadd.f32 %v1346_v6, %v1339_v0  ;;  %v1465_v9 = vadd.f32 %v1464_v7, %v1294_v62  ;;  %v2338_v10 = vpop.f32.mrb[5].mxu0 }
 0x36f   : > { %v1467_v11 = vpop.f32.mrb[6].mxu0 }
 0x370   : > { %v1470_v12 = vmul.f32 %v1465_v9, %v1465_v9  ;;  %v2339_v13 = vpop.f32.mrb[7].mxu0  ;;  %v1348_v14 = vmul.f32 0.7978846, %v1347_v8 }
 0x372   : > { %v1471_v15 = vmul.f32 %v1470_v12, %v1465_v9  ;;  %2450 = vtanh.f32 %v1348_v14 }
 0x374   : > { %v1472_v16 = vmul.f32 0.044715, %v1471_v15 }
 0x376   : > { %v1473_v17 = vadd.f32 %v1472_v16, %v1465_v9 }
 0x378   : > { %v1474_v18 = vmul.f32 0.7978846, %v1473_v17 }
 0x37a   : > { %2452 = vtanh.f32 %v1474_v18 }
 0x37c   : > { %v2451_v19 = vpop.eup %2450 }
 0x37d   : > { %v1350_v20 = vadd.f32 1.0, %v2451_v19 }
 0x37f   : > { %v1351_v21 = vmul.f32 0.5, %v1350_v20 }
 0x381   : > { %v1352_v22 = vmul.f32 %v1351_v21, %v1339_v0  ;;  %v2288_v21 = vld [vmem:[%s2986_s25] ss:$0 sm:$0xff] }
 0x383   : > { %v1353_v25 = vpack.c.bf16 %v1352_v22, %v1352_v22 }
 0x384   : > { %v2453_v26 = vpop.eup %2452 }
 0x385   : > { %v1360_v27 = vsel %vm1358_vm6, %v1353_v25, 0  ;;  %v1476_v28 = vadd.f32 1.0, %v2453_v26 }
 0x386   : > { %2329 = vmatpush3.bf16.msra.mxu1 %v1360_v27 }
 0x387   : > { %v1477_v30 = vmul.f32 0.5, %v1476_v28  ;;  %2340 = vmatprep.subr.bf16.mxu1 %v2503_v37 }
 0x389   : > { %v1478_v31 = vmul.f32 %v1477_v30, %v1465_v9  ;;  %2331 = vmatmul.mubr.msk.bf16.vlgmr.msra.gmra.mrb[0].mxu1 %vm1354_vm7, %v1258_v29 }
 0x38a   : > { %2342 = vmatprep.mubr.msk.bf16.mxu1 %vm2504_vm3, %v2503_v37 }
 0x38b   : > { %v1479_v32 = vpack.c.bf16 %v1478_v31, %v1478_v31 }
 0x38d   : > { %v1481_v33 = vsel %vm1358_vm6, %v1479_v32, 0 }
 0x38e   : > { %2341 = vmatpush3.bf16.msra.mxu1 %v1481_v33 }
 0x38f   : > { %2354 = vmatprep.subr.bf16.mxu1 %v2503_v37 }
 0x391   : > { %2343 = vmatmul.mubr.msk.bf16.vlgmr.msra.gmra.mrb[4].mxu1 %vm1354_vm7, %v1258_v29 }
 0x392   : > { %2362 = vmatprep.mubr.msk.bf16.mxu1 %vm2504_vm3, %v2503_v37  ;;  %2355 = vmatpush3.bf16.msra.mxu1 %v2442_v1 }
 0x393   : > { %2356 = vmatprep.subr.bf16.mxu1 %v2503_v37 }
 0x396   : > { %2357 = vmatpush3.bf16.msra.mxu1 %v2443_v2 }
 0x397   : > { %2358 = vmatprep.subr.bf16.mxu1 %v2503_v37 }
 0x39a   : > { %2359 = vmatpush3.bf16.msra.mxu1 %v2444_v3 }
 0x39b   : > { %2360 = vmatprep.subr.bf16.mxu1 %v2503_v37 }
 0x39e   : > { %2361 = vmatpush3.bf16.msra.mxu1 %v2445_v4 }
 0x45c   : > { %v1396_v34 = vpop.f32.mrb[0].mxu1 }
 0x45d   : > { %v1402_v36 = vadd.f32 %v1396_v34, %v2773_v23  ;;  %v2332_v38 = vpop.f32.mrb[1].mxu1 }
 0x45e   : > { %v1399_v39 = vpop.f32.mrb[2].mxu1  ;;  %v2458_v38 = vld [vmem:[%s2742_s12] sm:$0xff] (!%p2289_p8)  }
 0x45f   : > { %v2333_v40 = vpop.f32.mrb[3].mxu1  ;;  %v1408_v41 = vadd.f32 %v1406_v35, %v1402_v36  ;;  %v2506_v36 = vmov (!%p2289_p8), 0.0  }
 0x460   : > { %2366 = vmatprep.subr.mxu0 (!%p2289_p8), %v2506_v36  ;;  %2371 = vmatprep.subr.bf16.mxu1 (!%p2289_p8), %v2506_v36 }
 0x461   : > { %1409 = vst.msk [vmem:[#allocation2] sm:$0xf] %vm1261_vm2, %v1408_v41 }
 0x464   : > { %v1517_v42 = vpop.f32.mrb[4].mxu1 }
 0x465   : > { %v1523_v43 = vadd.f32 %v1517_v42, %v2775_v24  ;;  %v2344_v44 = vpop.f32.mrb[5].mxu1 }
 0x466   : > { %v1520_v45 = vpop.f32.mrb[6].mxu1 }
 0x467   : > { %v1524_v46 = vadd.f32 %v1523_v43, %v1406_v35  ;;  %v2345_v47 = vpop.f32.mrb[7].mxu1  ;;  %v2290_v43 = vld [vmem:[%s1080_s26] ss:$0 sm:$0xff] (!%p2289_p8) }
 0x468   : > { %v2291_v45 = vld [vmem:[%s1083_s23] ss:$0 sm:$0xff] (!%p2289_p8) }
 0x469   : > { %1525 = vst.msk [vmem:[#allocation2 + $0x4] sm:$0xf] %vm1261_vm2, %v1524_v46 }
 0x470   : > { %v1526_v48 = vld [vmem:[#allocation2] sm:$0xff] }
 0x471   : > { %v1530_v23 = vsel %vm1529_vm8, %v1526_v48, 0.0 }
 0x472   : > { %1531 = vadd.xlane.f32.xlu1 %v1530_v23  ;;  %v2459_v23 = vld [vmem:[%s2742_s12 + $0x8] sm:$0xff] (!%p2289_p8)  }
 0x4ff   : > { %v1532_v49 = vpop.xlane.xlu1 %1531 }
 0x500   : > { %v1533_v50 = vmul.f32 0.03125, %v1532_v49 }
 0x502   : > { %v1534_v51 = vsub.f32 %v1526_v48, %v1533_v50 }
 0x504   : > { %v1535_v52 = vmul.f32 %v1534_v51, %v1534_v51 }
 0x506   : > { %v1536_v24 = vsel %vm1529_vm8, %v1535_v52, 0.0  ;;  %v2293_v52 = vld [vmem:[%s1091_s15] ss:$0 sm:$0xff] (!%p2289_p8) }
 0x507   : > { %1537 = vadd.xlane.f32.xlu0 %v1536_v24 }
 0x594   : > { %v1538_v55 = vpop.xlane.xlu0 %1537 }
 0x595   : > { %v1539_v56 = vmul.f32 0.03125, %v1538_v55 }
 0x597   : > { %v1540_v57 = vadd.f32 1e-05, %v1539_v56 }
 0x599   : > { %2454 = vrsqrt.f32 %v1540_v57 }
 0x5a3   : > { %v2455_v58 = vpop.eup %2454 }
 0x5a4   : > { %v1542_v60 = vmul.f32 %v2455_v58, %v1534_v51 }
 0x5a6   : > { %v1549_v62 = vmul.f32 %v2277_v59, %v1542_v60 }
 0x5a8   : > { %v1556_v63 = vadd.f32 %v2278_v61, %v1549_v62 }
 0x5aa   : > { %v1561_v0 = vpack.c.bf16 %v1556_v63, %v1556_v63 }
 0x5ac   : > { %2351 = vmatmul.mubr.msk.bf16.vlgmr.msra.gmra.mrb[8].mxu0 %vm1529_vm8, %v1561_v0 }
 0x5ad   : > { %2368 = vmatprep.mubr.msk.f32.mxu0 (!%p2289_p8), %vm2507_vm10, %v2506_v36 }
 0x67f   : > { %v1618_v6 = vpop.f32.mrb[8].mxu0 }
 0x680   : > { %v1619_v7 = vadd.f32 %v2279_v5, %v1618_v6  ;;  %v2352_v8 = vpop.f32.mrb[9].mxu0 }
 0x681   : > { %v1621_v9 = vpop.f32.mrb[10].mxu0 }
 0x682   : > { %v1624_v10 = vmul.f32 %v1619_v7, %v1619_v7  ;;  %v2353_v11 = vpop.f32.mrb[11].mxu0 }
 0x684   : > { %v1625_v12 = vmul.f32 %v1624_v10, %v1619_v7 }
 0x686   : > { %v1626_v13 = vmul.f32 0.044715, %v1625_v12 }
 0x688   : > { %v1627_v14 = vadd.f32 %v1626_v13, %v1619_v7 }
 0x68a   : > { %v1628_v15 = vmul.f32 0.7978846, %v1627_v14 }
 0x68c   : > { %2456 = vtanh.f32 %v1628_v15 }
 0x696   : > { %v2457_v37 = vpop.eup %2456 }
 0x697   : > { %v1630_v16 = vadd.f32 1.0, %v2457_v37 }
 0x699   : > { %v1631_v17 = vmul.f32 0.5, %v1630_v16 }
 0x69b   : > { %v1632_v18 = vmul.f32 %v1631_v17, %v1619_v7 }
 0x69d   : > { %v1641_v19 = vpack.c.bf16 %v1632_v18, %v1632_v18 }
 0x69f   : > { %2363 = vmatmul.mubr.msk.bf16.vlgmr.msra.gmra.mrb[8].mxu1 %vm1666_vm9, %v1641_v19 }
 0x6a0   : > { %2375 = vmatprep.mubr.msk.bf16.mxu1 (!%p2289_p8), %vm2507_vm10, %v2506_v36  ;;  %2372 = vmatpush3.bf16.msra.mxu1 (!%p2289_p8), %v2458_v38 }
 0x6a1   : > { %2373 = vmatprep.subr.bf16.mxu1 (!%p2289_p8), %v2506_v36 }
 0x6a4   : > { %2374 = vmatpush3.bf16.msra.mxu1 (!%p2289_p8), %v2459_v23 }
 0x771   : > { %1723 = sbr.rel (%p2289_p8) target bundleno = 2662 (0xa66), region = 108 }
 0x772   : > { %v1704_v20 = vpop.f32.mrb[8].mxu1 }
 0x773   : > { %v1710_v22 = vadd.f32 %v1704_v20, %v1526_v48  ;;  %v2364_v25 = vpop.f32.mrb[9].mxu1  ;;  %v1754_v48 = vld [vmem:[%s2990_s24] sm:$0x3] (!%p2289_p8) }
 0x774   : > { %v1707_v26 = vpop.f32.mrb[10].mxu1 }
 0x775   : > { %v1718_v27 = vadd.f32 %v2288_v21, %v1710_v22  ;;  %v2365_v28 = vpop.f32.mrb[11].mxu1 }
 0x777   : > { %1719 = vst.msk [vmem:[#allocation2] sm:$0xff] %vm1529_vm8, %v1718_v27 }
 0x77e   : > { %v1724_v29 = vld [vmem:[#allocation2] sm:$0xff] }
 0x77f   : > { %v1727_v30 = vsel %vm1529_vm8, %v1724_v29, 0.0 }
 0x780   : > { %1728 = vadd.xlane.f32.xlu0 %v1727_v30 }
 0x80d   : > { %v1729_v31 = vpop.xlane.xlu0 %1728 }
 0x80e   : > { %v1730_v32 = vmul.f32 0.03125, %v1729_v31 }
 0x810   : > { %v1731_v33 = vsub.f32 %v1724_v29, %v1730_v32 }
 0x812   : > { %v1732_v34 = vmul.f32 %v1731_v33, %v1731_v33 }
 0x814   : > { %v1733_v35 = vsel %vm1529_vm8, %v1732_v34, 0.0 }
 0x815   : > { %1734 = vadd.xlane.f32.xlu0 %v1733_v35 }
 0x8a2   : > { %v1735_v39 = vpop.xlane.xlu0 %1734 }
 0x8a3   : > { %v1736_v40 = vmul.f32 0.03125, %v1735_v39 }
 0x8a5   : > { %v1737_v41 = vadd.f32 1e-05, %v1736_v40 }
 0x8a7   : > { %2460 = vrsqrt.f32 %v1737_v41 }
 0x8b1   : > { %v2461_v42 = vpop.eup %2460 }
 0x8b2   : > { %v1739_v44 = vmul.f32 %v2461_v42, %v1731_v33 }
 0x8b4   : > { %v1746_v46 = vmul.f32 %v2290_v43, %v1739_v44 }
 0x8b6   : > { %v1753_v47 = vadd.f32 %v2291_v45, %v1746_v46 }
 0x8b8   : > { %2367 = vmatpush3.msra.mxu0 %v1753_v47 }
 0x8b9   : > { %2369 = vmatmul.mubr.msk.f32.vlgmr.msra.gmra.mrb[0].mxu0 %vm1354_vm7, %v1754_v48 }
 0x98c   : > { %v1824_v49 = vpop.f32.mrb[0].mxu0 }
 0x98d   : > { %v1832_v50 = vpack.c.bf16 %v1824_v49, %v1824_v49  ;;  %v2370_v51 = vpop.f32.mrb[1].mxu0 }
 0x98f   : > { %2376 = vmatmul.mubr.msk.bf16.vlgmr.msra.gmra.mrb[0].mxu1 %vm1529_vm8, %v1832_v50 }
 0xa62   : > { %v1889_v24 = vpop.f32.mrb[0].mxu1 }
 0xa63   : > { %v1890_v53 = vadd.f32 %v2293_v52, %v1889_v24  ;;  %v2377_v54 = vpop.f32.mrb[1].mxu1 }
 0xa64   : > { %v1892_v55 = vpop.f32.mrb[2].mxu1 }
 0xa65   : > { %1896 = vst.msk [vmem:[%s2751_s7] sm:$0x3] %vm1895_vm11, %v1890_v53  ;;  %v2378_v56 = vpop.f32.mrb[3].mxu1 }
 0xa66 PF: > { %s2992_s12 = sld [smem:[#allocation6_spill]]  ;;  %s2993_s1 = sld [smem:[#allocation4_spill]] }
 0xa67   : > { %s2994_s22 = sld [smem:[#allocation5_spill]]  ;;  %s2995_s23 = sld [smem:[#allocation7_spill]] }
 0xa68   : > { %s2996_s24 = sld [smem:[#allocation8_spill]] }
 0xa6c   : > { %s30_s2 = sadd.s32 1, %s2992_s12  }
 0xa6d   : > { %p27_p9 = scmp.ge.s32.totalorder %s30_s2, 6  }
 0xa6f   :  { %29 = sbr.rel (!%p27_p9) target bundleno = 20 (0x14), region = 192 }

</bundles_post_ra>
